<compile_context>
chip_gen: v7x
topology: tpu7x:2x2x1
jax: 0.10.0
libtpu: 0.0.40
codegen_flags: <defaults>
</compile_context>

<pallas_src>
import functools

import jax
import jax.numpy as jnp
from jax.experimental import pallas as pl
from jax.experimental.pallas import tpu as pltpu

EPS = 1e-5


# ----------------------------- Pallas kernel -------------------------------

def _fused_basic_block_kernel(x_ref, sc_ref, a1_ref, t1_ref, a2_ref, t2_ref,
                              out_ref, c1_ref, c2_ref, *, stride):
    ho = out_ref.shape[1]          # output rows
    npix = out_ref.shape[2]        # Wo * planes (lane-packed channels)
    hp = x_ref.shape[1]            # padded input rows

    x = x_ref[0]                   # (Hp, Wp*Cin), bf16, aligned full-block read

    # ---- conv1 + bn1 + relu -------------------------------------------------
    # Row-selection matrices encode the H-taps and the H-stride exactly
    # (sel[i, r] == 1 iff r == stride*i + dh); everything stays on the MXU.
    oi = jax.lax.broadcasted_iota(jnp.int32, (ho, hp), 0)   # output row index
    ii = jax.lax.broadcasted_iota(jnp.int32, (ho, hp), 1)   # padded input row

    acc1 = jnp.zeros((ho, npix), jnp.float32)
    for dh in range(3):
        sel = (ii == stride * oi + dh).astype(x.dtype)                  # (Ho, Hp)
        lhs = jnp.dot(sel, x, preferred_element_type=jnp.float32
                      ).astype(x.dtype)                                 # (Ho, Wp*Cin)
        acc1 += jnp.dot(lhs, a1_ref[dh],
                        preferred_element_type=jnp.float32)             # (Ho, Wo*P)
    c1 = jnp.maximum(acc1 + t1_ref[...], 0.0)        # f32 epilogue (BN shift + ReLU)
    c1_bf = c1.astype(jnp.bfloat16)
    c1_ref[0] = c1_bf                                # conv1_out, written once (bf16)

    # ---- conv2 + bn2, residual add, relu ------------------------------------
    # H-taps over c1 with zero rows at the H boundary, again via 0/1 selection
    # matmuls (sel[i, j] == 1 iff j == i + dh - 1); c1 never leaves VMEM.
    ri = jax.lax.broadcasted_iota(jnp.int32, (ho, ho), 0)
    ci = jax.lax.broadcasted_iota(jnp.int32, (ho, ho), 1)

    acc2 = jnp.zeros((ho, npix), jnp.float32)
    for dh in range(3):
        if dh == 1:
            lhs = c1_bf
        else:
            sel = (ci == ri + (dh - 1)).astype(jnp.bfloat16)            # (Ho, Ho)
            lhs = jnp.dot(sel, c1_bf, preferred_element_type=jnp.float32
                          ).astype(jnp.bfloat16)
        acc2 += jnp.dot(lhs, a2_ref[dh],
                        preferred_element_type=jnp.float32)
    c2 = acc2 + t2_ref[...]                                             # f32
    c2_ref[0] = c2.astype(jnp.bfloat16)                                 # conv2_out
    out_ref[0] = jnp.maximum(c2 + sc_ref[0].astype(jnp.float32),
                             0.0).astype(jnp.bfloat16)                  # out


# ------------------------------- JAX glue -----------------------------------

def _build_toeplitz(w_oihw, gamma, beta, mean, var, *, n_in_cols, n_out_cols,
                    stride, offset, out_dtype):
    """Banded per-dh matrices with the BN scale folded in, plus the BN shift.

    A[dh, w_in*Cin + ci, wo*Cout + co] =
        scale[co] * W[co, ci, dh, w_in - stride*wo + offset]   if that tap is
        in [0, 3), else 0.   shift row = tile(beta - mean*scale, n_out_cols).
    """
    cout, cin = w_oihw.shape[0], w_oihw.shape[1]
    scale = gamma / jnp.sqrt(var + EPS)
    shift = beta - mean * scale
    w = w_oihw * scale[:, None, None, None]              # fold BN scale (f32)
    wt = jnp.transpose(w, (2, 3, 1, 0))                  # (3, 3, Cin, Cout)

    w_in = jnp.arange(n_in_cols)
    wo = jnp.arange(n_out_cols)
    dw = w_in[:, None] - stride * wo[None, :] + offset   # (n_in, n_out)
    valid = (dw >= 0) & (dw <= 2)
    a = wt[:, jnp.clip(dw, 0, 2)]                        # (3, n_in, n_out, Cin, Cout)
    a = jnp.where(valid[None, :, :, None, None], a, 0.0)
    a = jnp.transpose(a, (0, 1, 3, 2, 4))                # (3, n_in, Cin, n_out, Cout)
    a = a.reshape(3, n_in_cols * cin, n_out_cols * cout).astype(out_dtype)
    t = jnp.tile(shift, n_out_cols).astype(jnp.float32)[None, :]
    return a, t


def basic_block_forward(x_nchw, params, *, inplanes, planes, stride,
                        compute_dtype=jnp.bfloat16):
    n, cin, h, w = x_nchw.shape
    assert cin == inplanes
    if stride == 1:
        ho, wo = h, w
    else:
        assert stride == 2 and h % 2 == 0 and w % 2 == 0
        ho, wo = h // 2, w // 2
    npix = wo * planes                       # lane-packed (W, C) output width

    x_nhwc = jnp.transpose(x_nchw, (0, 2, 3, 1)).astype(jnp.float32)

    # Padded conv1 input, rows flattened to (Wp*Cin), bf16: x is read from HBM
    # exactly once (no im2col expansion).
    xpad = jnp.pad(x_nhwc, ((0, 0), (1, 1), (1, 1), (0, 0)))
    hp, wp = h + 2, w + 2
    k1 = wp * inplanes
    x_in = xpad.reshape(n, hp, k1).astype(compute_dtype)

    # Option-A shortcut (exactly the module's hardcoded LambdaLayer), bf16.
    if stride != 1 or inplanes != planes:
        pad = planes // 4
        assert stride == 2 and inplanes + 2 * pad == planes, (
            "option-A shortcut (as hardcoded by the module) requires "
            "stride == 2 and planes == inplanes + 2*(planes//4)")
        sc = x_nhwc[:, ::2, ::2, :]
        sc = jnp.pad(sc, ((0, 0), (0, 0), (0, 0), (pad, pad)))
    else:
        sc = x_nhwc
    sc_in = sc.reshape(n, ho, npix).astype(compute_dtype)

    # Banded (Toeplitz-along-W) weights with the BN scale folded in.
    a1, t1 = _build_toeplitz(params["w1"], params["g1"], params["b1"],
                             params["m1"], params["v1"],
                             n_in_cols=wp, n_out_cols=wo, stride=stride,
                             offset=0, out_dtype=compute_dtype)
    a2, t2 = _build_toeplitz(params["w2"], params["g2"], params["b2"],
                             params["m2"], params["v2"],
                             n_in_cols=wo, n_out_cols=wo, stride=1,
                             offset=1, out_dtype=compute_dtype)

    flops = n * (2 * 3 * ho * npix * (k1 + npix)        # main banded matmuls
                 + 2 * 3 * ho * hp * k1                 # conv1 row selection
                 + 2 * 2 * ho * ho * npix)              # conv2 row selection
    bytes_accessed = ((x_in.size + sc_in.size + a1.size + a2.size
                       + 3 * n * ho * npix) * 2
                      + (t1.size + t2.size) * 4)

    out, c1, c2 = pl.pallas_call(
        functools.partial(_fused_basic_block_kernel, stride=stride),
        out_shape=tuple(jax.ShapeDtypeStruct((n, ho, npix), compute_dtype)
                        for _ in range(3)),
        grid=(n,),
        in_specs=[
            pl.BlockSpec((1, hp, k1), lambda i: (i, 0, 0)),       # x (padded)
            pl.BlockSpec((1, ho, npix), lambda i: (i, 0, 0)),     # shortcut
            pl.BlockSpec((3, k1, npix), lambda i: (0, 0, 0)),     # conv1 bands
            pl.BlockSpec((1, npix), lambda i: (0, 0)),            # bn1 shift
            pl.BlockSpec((3, npix, npix), lambda i: (0, 0, 0)),   # conv2 bands
            pl.BlockSpec((1, npix), lambda i: (0, 0)),            # bn2 shift
        ],
        out_specs=tuple(pl.BlockSpec((1, ho, npix), lambda i: (i, 0, 0))
                        for _ in range(3)),
        compiler_params=pltpu.CompilerParams(
            dimension_semantics=("parallel",)),
        cost_estimate=pl.CostEstimate(flops=flops, transcendentals=0,
                                      bytes_accessed=bytes_accessed),
    )(x_in, sc_in, a1, t1, a2, t2)

    def to_nchw(flat):
        v = flat.astype(jnp.float32).reshape(n, ho, wo, planes)
        return jnp.transpose(v, (0, 3, 1, 2))

    return to_nchw(out), to_nchw(c1), to_nchw(c2)


# --------------------------- pure-JAX reference -----------------------------

def _ref_forward(x, params, *, inplanes, planes, stride):
    def conv(x, w, s):
        return jax.lax.conv_general_dilated(
            x, w, (s, s), ((1, 1), (1, 1)),
            dimension_numbers=("NCHW", "OIHW", "NCHW"))

    def bn(x, g, b, m, v):
        g, b, m, v = (a[None, :, None, None] for a in (g, b, m, v))
        return g * (x - m) / jnp.sqrt(v + EPS) + b

    c1 = jax.nn.relu(bn(conv(x, params["w1"], stride),
                        params["g1"], params["b1"], params["m1"], params["v1"]))
    c2 = bn(conv(c1, params["w2"], 1),
            params["g2"], params["b2"], params["m2"], params["v2"])
    if stride != 1 or inplanes != planes:
        pad = planes // 4
        sc = jnp.pad(x[:, :, ::2, ::2], ((0, 0), (pad, pad), (0, 0), (0, 0)))
    else:
        sc = x
    out = jax.nn.relu(c2 + sc)
    return out, c1, c2


# --------------------------------- main -------------------------------------

if __name__ == "__main__":
    N, inplanes, planes, H, W, stride = 2, 4, 8, 16, 16, 2

    key = jax.random.PRNGKey(0)
    ks = jax.random.split(key, 11)
    params = {
        "w1": 0.1 * jax.random.normal(ks[0], (planes, inplanes, 3, 3), jnp.float32),
        "g1": 1.0 + 0.1 * jax.random.normal(ks[1], (planes,), jnp.float32),
        "b1": 0.1 * jax.random.normal(ks[2], (planes,), jnp.float32),
        "m1": 0.05 * jax.random.normal(ks[3], (planes,), jnp.float32),
        "v1": 0.5 + jnp.abs(jax.random.normal(ks[4], (planes,), jnp.float32)),
        "w2": 0.1 * jax.random.normal(ks[5], (planes, planes, 3, 3), jnp.float32),
        "g2": 1.0 + 0.1 * jax.random.normal(ks[6], (planes,), jnp.float32),
        "b2": 0.1 * jax.random.normal(ks[7], (planes,), jnp.float32),
        "m2": 0.05 * jax.random.normal(ks[8], (planes,), jnp.float32),
        "v2": 0.5 + jnp.abs(jax.random.normal(ks[9], (planes,), jnp.float32)),
    }
    x = jax.random.normal(ks[10], (N, inplanes, H, W), jnp.float32)

    fwd = jax.jit(functools.partial(basic_block_forward,
                                    inplanes=inplanes, planes=planes,
                                    stride=stride))
    out, conv1_out, conv2_out = fwd(x, params)
    jax.block_until_ready((out, conv1_out, conv2_out))

    ref_out, ref_c1, ref_c2 = _ref_forward(x, params, inplanes=inplanes,
                                           planes=planes, stride=stride)
    assert out.shape == ref_out.shape == (N, planes, H // 2, W // 2)
    assert conv1_out.shape == ref_c1.shape
    assert conv2_out.shape == ref_c2.shape
    # Tolerance reflects bf16 MXU inputs / bf16 outputs chained across two
    # 3x3 convs; accumulation and the BN/ReLU/residual epilogue are f32.
    tol = dict(rtol=2e-2, atol=2e-2)
    assert jnp.allclose(out, ref_out, **tol)
    assert jnp.allclose(conv1_out, ref_c1, **tol)
    assert jnp.allclose(conv2_out, ref_c2, **tol)

    print("KERNEL_OK")
</pallas_src>

<mosaic_0001>
module attributes {stable_mosaic.version = 11 : i64} {
  func.func @_fused_basic_block_kernel(%arg0: i32, %arg1: memref<1x18x72xbf16, #tpu.memory_space<vmem>>, %arg2: memref<1x8x64xbf16, #tpu.memory_space<vmem>>, %arg3: memref<3x72x64xbf16, #tpu.memory_space<vmem>>, %arg4: memref<1x64xf32, #tpu.memory_space<vmem>>, %arg5: memref<3x64x64xbf16, #tpu.memory_space<vmem>>, %arg6: memref<1x64xf32, #tpu.memory_space<vmem>>, %arg7: memref<1x8x64xbf16, #tpu.memory_space<vmem>>, %arg8: memref<1x8x64xbf16, #tpu.memory_space<vmem>>, %arg9: memref<1x8x64xbf16, #tpu.memory_space<vmem>>) attributes {dimension_semantics = [#tpu.dimension_semantics<parallel>], iteration_bounds = array<i64: 2>, scalar_prefetch = 0 : i64, scratch_operands = 0 : i64, tpu.core_type = #tpu.core_type<tc>, window_params = [{transform_indices = @transform_0, window_bounds = array<i64: 1, 18, 72>}, {transform_indices = @transform_1, window_bounds = array<i64: 1, 8, 64>}, {pipeline_mode = #tpu.pipeline_mode<synchronous>, transform_indices = @transform_2, window_bounds = array<i64: 3, 72, 64>}, {pipeline_mode = #tpu.pipeline_mode<synchronous>, transform_indices = @transform_3, window_bounds = array<i64: 1, 64>}, {pipeline_mode = #tpu.pipeline_mode<synchronous>, transform_indices = @transform_4, window_bounds = array<i64: 3, 64, 64>}, {pipeline_mode = #tpu.pipeline_mode<synchronous>, transform_indices = @transform_5, window_bounds = array<i64: 1, 64>}, {transform_indices = @transform_6, window_bounds = array<i64: 1, 8, 64>}, {transform_indices = @transform_7, window_bounds = array<i64: 1, 8, 64>}, {transform_indices = @transform_8, window_bounds = array<i64: 1, 8, 64>}]} {
    %c0 = arith.constant 0 : index
    %c0_0 = arith.constant 0 : index
    %c0_1 = arith.constant 0 : index
    %0 = vector.load %arg1[%c0, %c0_0, %c0_1] : memref<1x18x72xbf16, #tpu.memory_space<vmem>>, vector<1x18x72xbf16>
    %1 = vector.shape_cast %0 : vector<1x18x72xbf16> to vector<18x72xbf16>
    %2 = tpu.iota {dimensions = array<i32: 0>} : vector<8x18xi32>
    %3 = tpu.iota {dimensions = array<i32: 1>} : vector<8x18xi32>
    %cst = arith.constant 0.000000e+00 : f32
    %4 = vector.broadcast %cst : f32 to vector<8x64xf32>
    %c2_i32 = arith.constant 2 : i32
    %5 = vector.broadcast %c2_i32 : i32 to vector<8x18xi32>
    %6 = arith.muli %5, %2 : vector<8x18xi32>
    %c0_i32 = arith.constant 0 : i32
    %7 = vector.broadcast %c0_i32 : i32 to vector<8x18xi32>
    %8 = arith.addi %6, %7 : vector<8x18xi32>
    %9 = arith.cmpi eq, %3, %8 : vector<8x18xi32>
    %10 = arith.extui %9 : vector<8x18xi1> to vector<8x18xi32>
    %11 = arith.sitofp %10 : vector<8x18xi32> to vector<8x18xf32>
    %12 = arith.truncf %11 : vector<8x18xf32> to vector<8x18xbf16>
    %cst_2 = arith.constant dense<0.000000e+00> : vector<8x72xf32>
    %13 = tpu.matmul %12, %1, %cst_2 {dimension_numbers = #tpu.dot_dimension_numbers<[1], [0], [0], [1], [0, 0, 1, 1], [], []>} : vector<8x18xbf16>, vector<18x72xbf16>, vector<8x72xf32> -> vector<8x72xf32>
    %14 = arith.truncf %13 : vector<8x72xf32> to vector<8x72xbf16>
    %c0_3 = arith.constant 0 : index
    %c0_4 = arith.constant 0 : index
    %c0_5 = arith.constant 0 : index
    %15 = vector.load %arg3[%c0_3, %c0_4, %c0_5] : memref<3x72x64xbf16, #tpu.memory_space<vmem>>, vector<1x72x64xbf16>
    %16 = vector.shape_cast %15 : vector<1x72x64xbf16> to vector<72x64xbf16>
    %cst_6 = arith.constant dense<0.000000e+00> : vector<8x64xf32>
    %17 = tpu.matmul %14, %16, %cst_6 {dimension_numbers = #tpu.dot_dimension_numbers<[1], [0], [0], [1], [0, 0, 1, 1], [], []>} : vector<8x72xbf16>, vector<72x64xbf16>, vector<8x64xf32> -> vector<8x64xf32>
    %18 = arith.addf %4, %17 : vector<8x64xf32>
    %c2_i32_7 = arith.constant 2 : i32
    %19 = vector.broadcast %c2_i32_7 : i32 to vector<8x18xi32>
    %20 = arith.muli %19, %2 : vector<8x18xi32>
    %c1_i32 = arith.constant 1 : i32
    %21 = vector.broadcast %c1_i32 : i32 to vector<8x18xi32>
    %22 = arith.addi %20, %21 : vector<8x18xi32>
    %23 = arith.cmpi eq, %3, %22 : vector<8x18xi32>
    %24 = arith.extui %23 : vector<8x18xi1> to vector<8x18xi32>
    %25 = arith.sitofp %24 : vector<8x18xi32> to vector<8x18xf32>
    %26 = arith.truncf %25 : vector<8x18xf32> to vector<8x18xbf16>
    %cst_8 = arith.constant dense<0.000000e+00> : vector<8x72xf32>
    %27 = tpu.matmul %26, %1, %cst_8 {dimension_numbers = #tpu.dot_dimension_numbers<[1], [0], [0], [1], [0, 0, 1, 1], [], []>} : vector<8x18xbf16>, vector<18x72xbf16>, vector<8x72xf32> -> vector<8x72xf32>
    %28 = arith.truncf %27 : vector<8x72xf32> to vector<8x72xbf16>
    %c1 = arith.constant 1 : index
    %c0_9 = arith.constant 0 : index
    %c0_10 = arith.constant 0 : index
    %29 = vector.load %arg3[%c1, %c0_9, %c0_10] : memref<3x72x64xbf16, #tpu.memory_space<vmem>>, vector<1x72x64xbf16>
    %30 = vector.shape_cast %29 : vector<1x72x64xbf16> to vector<72x64xbf16>
    %cst_11 = arith.constant dense<0.000000e+00> : vector<8x64xf32>
    %31 = tpu.matmul %28, %30, %cst_11 {dimension_numbers = #tpu.dot_dimension_numbers<[1], [0], [0], [1], [0, 0, 1, 1], [], []>} : vector<8x72xbf16>, vector<72x64xbf16>, vector<8x64xf32> -> vector<8x64xf32>
    %32 = arith.addf %18, %31 : vector<8x64xf32>
    %c2_i32_12 = arith.constant 2 : i32
    %33 = vector.broadcast %c2_i32_12 : i32 to vector<8x18xi32>
    %34 = arith.muli %33, %2 : vector<8x18xi32>
    %c2_i32_13 = arith.constant 2 : i32
    %35 = vector.broadcast %c2_i32_13 : i32 to vector<8x18xi32>
    %36 = arith.addi %34, %35 : vector<8x18xi32>
    %37 = arith.cmpi eq, %3, %36 : vector<8x18xi32>
    %38 = arith.extui %37 : vector<8x18xi1> to vector<8x18xi32>
    %39 = arith.sitofp %38 : vector<8x18xi32> to vector<8x18xf32>
    %40 = arith.truncf %39 : vector<8x18xf32> to vector<8x18xbf16>
    %cst_14 = arith.constant dense<0.000000e+00> : vector<8x72xf32>
    %41 = tpu.matmul %40, %1, %cst_14 {dimension_numbers = #tpu.dot_dimension_numbers<[1], [0], [0], [1], [0, 0, 1, 1], [], []>} : vector<8x18xbf16>, vector<18x72xbf16>, vector<8x72xf32> -> vector<8x72xf32>
    %42 = arith.truncf %41 : vector<8x72xf32> to vector<8x72xbf16>
    %c2 = arith.constant 2 : index
    %c0_15 = arith.constant 0 : index
    %c0_16 = arith.constant 0 : index
    %43 = vector.load %arg3[%c2, %c0_15, %c0_16] : memref<3x72x64xbf16, #tpu.memory_space<vmem>>, vector<1x72x64xbf16>
    %44 = vector.shape_cast %43 : vector<1x72x64xbf16> to vector<72x64xbf16>
    %cst_17 = arith.constant dense<0.000000e+00> : vector<8x64xf32>
    %45 = tpu.matmul %42, %44, %cst_17 {dimension_numbers = #tpu.dot_dimension_numbers<[1], [0], [0], [1], [0, 0, 1, 1], [], []>} : vector<8x72xbf16>, vector<72x64xbf16>, vector<8x64xf32> -> vector<8x64xf32>
    %46 = arith.addf %32, %45 : vector<8x64xf32>
    %c0_18 = arith.constant 0 : index
    %c0_19 = arith.constant 0 : index
    %47 = vector.load %arg4[%c0_18, %c0_19] : memref<1x64xf32, #tpu.memory_space<vmem>>, vector<1x64xf32>
    %48 = vector.broadcast %47 : vector<1x64xf32> to vector<8x64xf32>
    %49 = arith.addf %46, %48 : vector<8x64xf32>
    %cst_20 = arith.constant 0.000000e+00 : f32
    %50 = vector.broadcast %cst_20 : f32 to vector<8x64xf32>
    %51 = arith.maximumf %49, %50 : vector<8x64xf32>
    %52 = arith.truncf %51 : vector<8x64xf32> to vector<8x64xbf16>
    %c0_21 = arith.constant 0 : index
    %c0_22 = arith.constant 0 : index
    %c0_23 = arith.constant 0 : index
    %53 = vector.load %arg8[%c0_21, %c0_22, %c0_23] : memref<1x8x64xbf16, #tpu.memory_space<vmem>>, vector<1x8x64xbf16>
    %54 = vector.shape_cast %53 : vector<1x8x64xbf16> to vector<8x64xbf16>
    %55 = vector.shape_cast %52 : vector<8x64xbf16> to vector<1x8x64xbf16>
    tpu.vector_store %arg8[%c0_21, %c0_22, %c0_23], %55 {strides = array<i32>} : memref<1x8x64xbf16, #tpu.memory_space<vmem>>, vector<1x8x64xbf16>,
    %56 = tpu.iota {dimensions = array<i32: 0>} : vector<8x8xi32>
    %57 = tpu.iota {dimensions = array<i32: 1>} : vector<8x8xi32>
    %cst_24 = arith.constant 0.000000e+00 : f32
    %58 = vector.broadcast %cst_24 : f32 to vector<8x64xf32>
    %c-1_i32 = arith.constant -1 : i32
    %59 = vector.broadcast %c-1_i32 : i32 to vector<8x8xi32>
    %60 = arith.addi %56, %59 : vector<8x8xi32>
    %61 = arith.cmpi eq, %57, %60 : vector<8x8xi32>
    %62 = arith.extui %61 : vector<8x8xi1> to vector<8x8xi32>
    %63 = arith.sitofp %62 : vector<8x8xi32> to vector<8x8xf32>
    %64 = arith.truncf %63 : vector<8x8xf32> to vector<8x8xbf16>
    %cst_25 = arith.constant dense<0.000000e+00> : vector<8x64xf32>
    %65 = tpu.matmul %64, %52, %cst_25 {dimension_numbers = #tpu.dot_dimension_numbers<[1], [0], [0], [1], [0, 0, 1, 1], [], []>} : vector<8x8xbf16>, vector<8x64xbf16>, vector<8x64xf32> -> vector<8x64xf32>
    %66 = arith.truncf %65 : vector<8x64xf32> to vector<8x64xbf16>
    %c0_26 = arith.constant 0 : index
    %c0_27 = arith.constant 0 : index
    %c0_28 = arith.constant 0 : index
    %67 = vector.load %arg5[%c0_26, %c0_27, %c0_28] : memref<3x64x64xbf16, #tpu.memory_space<vmem>>, vector<1x64x64xbf16>
    %68 = vector.shape_cast %67 : vector<1x64x64xbf16> to vector<64x64xbf16>
    %cst_29 = arith.constant dense<0.000000e+00> : vector<8x64xf32>
    %69 = tpu.matmul %66, %68, %cst_29 {dimension_numbers = #tpu.dot_dimension_numbers<[1], [0], [0], [1], [0, 0, 1, 1], [], []>} : vector<8x64xbf16>, vector<64x64xbf16>, vector<8x64xf32> -> vector<8x64xf32>
    %70 = arith.addf %58, %69 : vector<8x64xf32>
    %c1_30 = arith.constant 1 : index
    %c0_31 = arith.constant 0 : index
    %c0_32 = arith.constant 0 : index
    %71 = vector.load %arg5[%c1_30, %c0_31, %c0_32] : memref<3x64x64xbf16, #tpu.memory_space<vmem>>, vector<1x64x64xbf16>
    %72 = vector.shape_cast %71 : vector<1x64x64xbf16> to vector<64x64xbf16>
    %cst_33 = arith.constant dense<0.000000e+00> : vector<8x64xf32>
    %73 = tpu.matmul %52, %72, %cst_33 {dimension_numbers = #tpu.dot_dimension_numbers<[1], [0], [0], [1], [0, 0, 1, 1], [], []>} : vector<8x64xbf16>, vector<64x64xbf16>, vector<8x64xf32> -> vector<8x64xf32>
    %74 = arith.addf %70, %73 : vector<8x64xf32>
    %c1_i32_34 = arith.constant 1 : i32
    %75 = vector.broadcast %c1_i32_34 : i32 to vector<8x8xi32>
    %76 = arith.addi %56, %75 : vector<8x8xi32>
    %77 = arith.cmpi eq, %57, %76 : vector<8x8xi32>
    %78 = arith.extui %77 : vector<8x8xi1> to vector<8x8xi32>
    %79 = arith.sitofp %78 : vector<8x8xi32> to vector<8x8xf32>
    %80 = arith.truncf %79 : vector<8x8xf32> to vector<8x8xbf16>
    %cst_35 = arith.constant dense<0.000000e+00> : vector<8x64xf32>
    %81 = tpu.matmul %80, %52, %cst_35 {dimension_numbers = #tpu.dot_dimension_numbers<[1], [0], [0], [1], [0, 0, 1, 1], [], []>} : vector<8x8xbf16>, vector<8x64xbf16>, vector<8x64xf32> -> vector<8x64xf32>
    %82 = arith.truncf %81 : vector<8x64xf32> to vector<8x64xbf16>
    %c2_36 = arith.constant 2 : index
    %c0_37 = arith.constant 0 : index
    %c0_38 = arith.constant 0 : index
    %83 = vector.load %arg5[%c2_36, %c0_37, %c0_38] : memref<3x64x64xbf16, #tpu.memory_space<vmem>>, vector<1x64x64xbf16>
    %84 = vector.shape_cast %83 : vector<1x64x64xbf16> to vector<64x64xbf16>
    %cst_39 = arith.constant dense<0.000000e+00> : vector<8x64xf32>
    %85 = tpu.matmul %82, %84, %cst_39 {dimension_numbers = #tpu.dot_dimension_numbers<[1], [0], [0], [1], [0, 0, 1, 1], [], []>} : vector<8x64xbf16>, vector<64x64xbf16>, vector<8x64xf32> -> vector<8x64xf32>
    %86 = arith.addf %74, %85 : vector<8x64xf32>
    %c0_40 = arith.constant 0 : index
    %c0_41 = arith.constant 0 : index
    %87 = vector.load %arg6[%c0_40, %c0_41] : memref<1x64xf32, #tpu.memory_space<vmem>>, vector<1x64xf32>
    %88 = vector.broadcast %87 : vector<1x64xf32> to vector<8x64xf32>
    %89 = arith.addf %86, %88 : vector<8x64xf32>
    %90 = arith.truncf %89 : vector<8x64xf32> to vector<8x64xbf16>
    %c0_42 = arith.constant 0 : index
    %c0_43 = arith.constant 0 : index
    %c0_44 = arith.constant 0 : index
    %91 = vector.load %arg9[%c0_42, %c0_43, %c0_44] : memref<1x8x64xbf16, #tpu.memory_space<vmem>>, vector<1x8x64xbf16>
    %92 = vector.shape_cast %91 : vector<1x8x64xbf16> to vector<8x64xbf16>
    %93 = vector.shape_cast %90 : vector<8x64xbf16> to vector<1x8x64xbf16>
    tpu.vector_store %arg9[%c0_42, %c0_43, %c0_44], %93 {strides = array<i32>} : memref<1x8x64xbf16, #tpu.memory_space<vmem>>, vector<1x8x64xbf16>,
    %c0_45 = arith.constant 0 : index
    %c0_46 = arith.constant 0 : index
    %c0_47 = arith.constant 0 : index
    %94 = vector.load %arg2[%c0_45, %c0_46, %c0_47] : memref<1x8x64xbf16, #tpu.memory_space<vmem>>, vector<1x8x64xbf16>
    %95 = vector.shape_cast %94 : vector<1x8x64xbf16> to vector<8x64xbf16>
    %96 = arith.extf %95 : vector<8x64xbf16> to vector<8x64xf32>
    %97 = arith.addf %89, %96 : vector<8x64xf32>
    %cst_48 = arith.constant 0.000000e+00 : f32
    %98 = vector.broadcast %cst_48 : f32 to vector<8x64xf32>
    %99 = arith.maximumf %97, %98 : vector<8x64xf32>
    %100 = arith.truncf %99 : vector<8x64xf32> to vector<8x64xbf16>
    %c0_49 = arith.constant 0 : index
    %c0_50 = arith.constant 0 : index
    %c0_51 = arith.constant 0 : index
    %101 = vector.load %arg7[%c0_49, %c0_50, %c0_51] : memref<1x8x64xbf16, #tpu.memory_space<vmem>>, vector<1x8x64xbf16>
    %102 = vector.shape_cast %101 : vector<1x8x64xbf16> to vector<8x64xbf16>
    %103 = vector.shape_cast %100 : vector<8x64xbf16> to vector<1x8x64xbf16>
    tpu.vector_store %arg7[%c0_49, %c0_50, %c0_51], %103 {strides = array<i32>} : memref<1x8x64xbf16, #tpu.memory_space<vmem>>, vector<1x8x64xbf16>,
    return
  }
  func.func @transform_0(%arg0: i32) -> (i32, i32, i32) {
    %c0_i32 = arith.constant 0 : i32
    %c0_i32_0 = arith.constant 0 : i32
    %c0_i32_1 = arith.constant 0 : i32
    return %arg0, %c0_i32, %c0_i32_0 : i32, i32, i32
  }
  func.func @transform_1(%arg0: i32) -> (i32, i32, i32) {
    %c0_i32 = arith.constant 0 : i32
    %c0_i32_0 = arith.constant 0 : i32
    %c0_i32_1 = arith.constant 0 : i32
    return %arg0, %c0_i32, %c0_i32_0 : i32, i32, i32
  }
  func.func @transform_2(%arg0: i32) -> (i32, i32, i32) {
    %c0_i32 = arith.constant 0 : i32
    %c0_i32_0 = arith.constant 0 : i32
    %c0_i32_1 = arith.constant 0 : i32
    %c0_i32_2 = arith.constant 0 : i32
    return %c0_i32, %c0_i32_0, %c0_i32_1 : i32, i32, i32
  }
  func.func @transform_3(%arg0: i32) -> (i32, i32) {
    %c0_i32 = arith.constant 0 : i32
    %c0_i32_0 = arith.constant 0 : i32
    %c0_i32_1 = arith.constant 0 : i32
    return %c0_i32, %c0_i32_0 : i32, i32
  }
  func.func @transform_4(%arg0: i32) -> (i32, i32, i32) {
    %c0_i32 = arith.constant 0 : i32
    %c0_i32_0 = arith.constant 0 : i32
    %c0_i32_1 = arith.constant 0 : i32
    %c0_i32_2 = arith.constant 0 : i32
    return %c0_i32, %c0_i32_0, %c0_i32_1 : i32, i32, i32
  }
  func.func @transform_5(%arg0: i32) -> (i32, i32) {
    %c0_i32 = arith.constant 0 : i32
    %c0_i32_0 = arith.constant 0 : i32
    %c0_i32_1 = arith.constant 0 : i32
    return %c0_i32, %c0_i32_0 : i32, i32
  }
  func.func @transform_6(%arg0: i32) -> (i32, i32, i32) {
    %c0_i32 = arith.constant 0 : i32
    %c0_i32_0 = arith.constant 0 : i32
    %c0_i32_1 = arith.constant 0 : i32
    return %arg0, %c0_i32, %c0_i32_0 : i32, i32, i32
  }
  func.func @transform_7(%arg0: i32) -> (i32, i32, i32) {
    %c0_i32 = arith.constant 0 : i32
    %c0_i32_0 = arith.constant 0 : i32
    %c0_i32_1 = arith.constant 0 : i32
    return %arg0, %c0_i32, %c0_i32_0 : i32, i32, i32
  }
  func.func @transform_8(%arg0: i32) -> (i32, i32, i32) {
    %c0_i32 = arith.constant 0 : i32
    %c0_i32_0 = arith.constant 0 : i32
    %c0_i32_1 = arith.constant 0 : i32
    return %arg0, %c0_i32, %c0_i32_0 : i32, i32, i32
  }
}

</mosaic_0001>

<bundles_post_ra>
// kernel: tile.13
= control target key start
LH: loop header
LB: loop body
LE: loop exit
PB: predicated region body
PF: predicated region fallthrough
CT: control target
= control target key end

     0   :  { %s22_s0 = inlined_call_operand.vmem [shape: f32[8], index: 0, kind: input, shape index: {}]   ;;  %s23_s1 = inlined_call_operand.vmem [shape: f32[8,8], index: 1, kind: output, shape index: {}]  }
   0x1   :  { %v4_v0 = vld [vmem:[%s22_s0] ss:$0 sm:$0xff] }
   0x2   :  { %5 = vst [vmem:[%s23_s1] sm:$0xff] %v4_v0 }

// kernel: tile.14
= control target key start
LH: loop header
LB: loop body
LE: loop exit
PB: predicated region body
PF: predicated region fallthrough
CT: control target
= control target key end

     0   :  { %s67_s10 = smov 56   ;;  %s68_s11 = smov 40   ;;  %vm3_vm0 = vcmask 64512   ;;  %vm9_vm1 = vcmask 523712   ;;  %vm15_vm2 = vcmask 458112   ;;  %vm21_vm3 = vcmask 392512   ;;  %s111_s0 = inlined_call_operand.vmem [shape: f32[8,8], index: 0, kind: input, shape index: {}]   ;;  %s112_s1 = inlined_call_operand.vmem [shape: f32[1,64], index: 1, kind: output, shape index: {}]  }
   0x1   :  { %v53_v0 = vld [vmem:[%s111_s0 + $0x7] sm:$0x1]   ;;  %v55_v1 = vld [vmem:[%s111_s0 + $0x5] sm:$0x1]   ;;  %v54_v2 = vld [vmem:[%s111_s0 + $0x6] sm:$0x1]  }
   0x2   :  { %7 = vrot.lane.b32.xlu0 %v53_v0, %s67_s10  ;;  %19 = vrot.lane.b32.xlu1 %v55_v1, %s68_s11  ;;  %v56_v3 = vld [vmem:[%s111_s0 + $0x4] sm:$0x1]   ;;  %v2_v4 = vld [vmem:[%s111_s0] sm:$0x1]   ;;  %s69_s18 = smov 48   ;;  %s70_s19 = smov 32  }
   0x3   :  { %4 = vst.msk [vmem:[#allocation0] sm:$0x1] %vm3_vm0, %v2_v4   ;;  %v57_v5 = vld [vmem:[%s111_s0 + $0x3] sm:$0x1]   ;;  %v58_v6 = vld [vmem:[%s111_s0 + $0x2] sm:$0x1]  }
   0x4   :  { %s71_s24 = smov 24   ;;  %s72_s25 = smov 16   ;;  %v59_v7 = vld [vmem:[%s111_s0 + $0x1] sm:$0x1]   ;;  %vm27_vm4 = vcmask 326912   ;;  %vm33_vm5 = vcmask 261312  }
   0x5   :  { %s73_s0 = smov 8   ;;  %vm39_vm6 = vcmask 195712   ;;  %vm45_vm7 = vcmask 130112  }
   0x6   :  { %13 = vrot.lane.b32.xlu0 %v54_v2, %s69_s18  ;;  %25 = vrot.lane.b32.xlu1 %v56_v3, %s70_s19 }
   0xa   :  { %31 = vrot.lane.b32.xlu0 %v57_v5, %s71_s24  ;;  %37 = vrot.lane.b32.xlu1 %v58_v6, %s72_s25 }
   0xe   :  { %43 = vrot.lane.b32.xlu0 %v59_v7, %s73_s0 }
  0x74   :  { %v8_v8 = vpop.permute.xlu0 %7   ;;  %v20_v9 = vpop.permute.xlu1 %19  }
  0x75   :  { %10 = vst.msk [vmem:[#allocation0] sm:$0x1] %vm9_vm1, %v8_v8  }
  0x78   :  { %v14_v10 = vpop.permute.xlu0 %13   ;;  %v26_v11 = vpop.permute.xlu1 %25  }
  0x79   :  { %16 = vst.msk [vmem:[#allocation0] sm:$0x1] %vm15_vm2, %v14_v10  }
  0x7a   :  { %22 = vst.msk [vmem:[#allocation0] sm:$0x1] %vm21_vm3, %v20_v9  }
  0x7b   :  { %28 = vst.msk [vmem:[#allocation0] sm:$0x1] %vm27_vm4, %v26_v11  }
  0x7c   :  { %v32_v12 = vpop.permute.xlu0 %31   ;;  %v38_v13 = vpop.permute.xlu1 %37  }
  0x7d   :  { %34 = vst.msk [vmem:[#allocation0] sm:$0x1] %vm33_vm5, %v32_v12  }
  0x7e   :  { %40 = vst.msk [vmem:[#allocation0] sm:$0x1] %vm39_vm6, %v38_v13  }
  0x80   :  { %v44_v14 = vpop.permute.xlu0 %43  }
  0x81   :  { %46 = vst.msk [vmem:[#allocation0] sm:$0x1] %vm45_vm7, %v44_v14  }
  0x88   :  { %v50_v15 = vld [vmem:[#allocation0] sm:$0x1] }
  0x89   :  { %52 = vst [vmem:[%s112_s1] sm:$0x1] %v50_v15 }

// kernel: basic_block_forward.1
= control target key start
LH: loop header
LB: loop body
LE: loop exit
PB: predicated region body
PF: predicated region fallthrough
CT: control target
= control target key end

     0   :  { %s1595_s27 = smov 0   ;;  %s1820_s0 = inlined_call_operand.vmem [shape: bf16[2,18,72], index: 0, kind: input, shape index: {}]   ;;  %s1821_s1 = inlined_call_operand.vmem [shape: bf16[2,8,64], index: 1, kind: input, shape index: {}]   ;;  %s1822_s2 = inlined_call_operand.vmem [shape: bf16[3,72,64], index: 2, kind: input, shape index: {}]   ;;  %s1823_s3 = inlined_call_operand.vmem [shape: f32[1,64], index: 3, kind: input, shape index: {}]   ;;  %s1824_s4 = inlined_call_operand.vmem [shape: bf16[3,64,64], index: 4, kind: input, shape index: {}]   ;;  %s1825_s5 = inlined_call_operand.vmem [shape: f32[1,64], index: 5, kind: input, shape index: {}]   ;;  %s1826_s6 = inlined_call_operand.vmem [shape: bf16[2,8,64], index: 6, kind: output, shape index: {0}]   ;;  %s1827_s7 = inlined_call_operand.vmem [shape: bf16[2,8,64], index: 7, kind: output, shape index: {1}]   ;;  %s1828_s8 = inlined_call_operand.vmem [shape: bf16[2,8,64], index: 8, kind: output, shape index: {2}]  }
   0x1 LB: > { %s1247_s28 = sadd.s32 4294967295, %s1546_s27   ;;  %p1251_p0 = scmp.ge.s32.totalorder %s1546_s27, 1  ;;  %s1546_s27 = sphi %s1595_s27, %s19_s27  }
   0x2   : > { %p276_p1 = scmp.lt.s32.totalorder %s1546_s27, 3 }
   0x4   : > { %p277_p2 = pnand %p1251_p0, %p276_p1 }
   0x5   : > { %p321_p3 = scmp.lt.s32.totalorder (!%p277_p2), %s1247_s28, 1  ;;  %v346_v0 = vlaneseq (!%p277_p2)  ;;  %v1548_v1 = vmov (!%p277_p2), 0.0   ;;  %vm1549_vm0 = vmmov (!%p277_p2), 0   ;;  %v1513_v2 = vld [vmem:[%s1822_s2] sm:$0xff] (!%p277_p2)   ;;  %v1514_v5 = vld [vmem:[%s1822_s2 + $0x8] sm:$0xff] (!%p277_p2)   ;;  %v1516_v8 = vld [vmem:[%s1822_s2 + $0x10] sm:$0xff] (!%p277_p2)  }
   0x6   : > { %280 = sbr.rel (%p277_p2) target bundleno = 1154 (0x482), region = 44  ;;  %1386 = vmatprep.subr.bf16.mxu0 (!%p277_p2), %v1548_v1  ;;  %1390 = vmatprep.mubr.msk.bf16.mxu0 (!%p277_p2), %vm1549_vm0, %v1548_v1  ;;  %vm368_vm2 = vcmask (!%p277_p2), 1040384   ;;  %vm364_vm3 = vcmask (!%p277_p2), 146432   ;;  %v1518_v12 = vld [vmem:[%s1822_s2 + $0x18] sm:$0xff] (!%p277_p2)   ;;  %v1515_v16 = vld [vmem:[%s1822_s2 + $0x24] sm:$0xff] (!%p277_p2)   ;;  %v1517_v18 = vld [vmem:[%s1822_s2 + $0x2c] sm:$0xff] (!%p277_p2)  }
   0x7   : > { %v1611_v3 = vshrl.u32 (!%p277_p2), %v346_v0, 7  ;;  %v1613_v4 = vand.u32 (!%p277_p2), 127, %v346_v0  ;;  %1416 = vmatprep.subr.bf16.mxu1 (!%p277_p2), %v1548_v1  ;;  %1426 = vmatprep.mubr.msk.bf16.mxu1 (!%p277_p2), %vm1549_vm0, %v1548_v1  ;;  %v1520_v19 = vld [vmem:[%s1822_s2 + $0x20] ss:$0 sps:$4 sm:$0xff] (!%p277_p2)   ;;  %v1519_v20 = vld [vmem:[%s1822_s2 + $0x34] sm:$0xff] (!%p277_p2)   ;;  %vm512_vm5 = vcmask (!%p277_p2), 1043456  }
   0x8   : > { %1417 = vmatpush3.bf16.msra.mxu1 (!%p277_p2), %v1513_v2  ;;  %v587_v21 = vsel (!%p277_p2), %vm512_vm5, %v1520_v19, 0  ;;  %v1521_v22 = vld [vmem:[%s1822_s2 + $0x3c] sm:$0xff] (!%p277_p2)   ;;  %v1522_v23 = vld [vmem:[%s1822_s2 + $0x44] ss:$0 sps:$4 sm:$0xff] (!%p277_p2)   ;;  %vm508_vm6 = vcmask (!%p277_p2), 588800   ;;  %v1523_v38 = vld [vmem:[%s1822_s2 + $0x48] sm:$0xff] (!%p277_p2)  }
   0x9   : > { %v1623_v6 = vmul.u32 (!%p277_p2), 2, %v1611_v3  ;;  %1418 = vmatprep.subr.bf16.mxu1 (!%p277_p2), %v1548_v1  ;;  %v514_v24 = vsel (!%p277_p2), %vm512_vm5, %v1522_v23, 0  ;;  %v1524_v39 = vld [vmem:[%s1822_s2 + $0x50] sm:$0xff] (!%p277_p2)   ;;  %v1525_v40 = vld [vmem:[%s1822_s2 + $0x58] sm:$0xff] (!%p277_p2)   ;;  %v1526_v41 = vld [vmem:[%s1822_s2 + $0x60] sm:$0xff] (!%p277_p2)   ;;  %v774_v61 = vadd.s32 (!%p277_p2), 4294967295, %v1611_v3 }
   0xa   : > { %v1527_v42 = vld [vmem:[%s1822_s2 + $0x68] ss:$0 sps:$4 sm:$0xff] (!%p277_p2)   ;;  %v1532_v58 = vld [vmem:[%s1824_s4] sm:$0xff] (!%p277_p2)   ;;  %v1534_v60 = vld [vmem:[%s1824_s4 + $0x10] sm:$0xff] (!%p277_p2)   ;;  %vm772_vm9 = vcmask (!%p277_p2), 519168   ;;  %vm779_vm10 = vcmask (!%p277_p2), 64512  }
   0xb   : > { %vm351_vm1 = vcmp.eq.s32.totalorder (!%p277_p2), %v1613_v4, %v1623_v6  ;;  %v422_v7 = vadd.s32 (!%p277_p2), 1, %v1623_v6  ;;  %v629_v30 = vadd.s32 (!%p277_p2), 2, %v1623_v6  ;;  %v719_v43 = vsel (!%p277_p2), %vm512_vm5, %v1527_v42, 0  ;;  %v1533_v59 = vld [vmem:[%s1824_s4 + $0x8] sm:$0xff] (!%p277_p2)   ;;  %v1301_v63 = vld [vmem:[%s1823_s3] ss:$0 sm:$0xff] (!%p277_p2) }
   0xc   : > { %1419 = vmatpush3.bf16.msra.mxu1 (!%p277_p2), %v1514_v5  ;;  %v1257_v11 = vsel (!%p277_p2), %vm351_vm1, 1.0, %v1548_v1  ;;  %vm775_vm8 = vcmp.eq.s32.totalorder (!%p277_p2), %v1613_v4, %v774_v61  ;;  %vm868_vm11 = vcmask (!%p277_p2), 523264  }
   0xd   : > { %s1830_s28 = smov (!%p321_p3, %s1247_s28), 1  ;;  %vm423_vm4 = vcmp.eq.s32.totalorder %v1613_v4, %v422_v7  ;;  %1420 = vmatprep.subr.bf16.mxu1 %v1548_v1  ;;  %v354_v15 = vpack.c.bf16 %v1257_v11, %v1257_v11  ;;  %vm630_vm7 = vcmp.eq.s32.totalorder %v1613_v4, %v629_v30 }
   0xe   : > { %s1500_s11 = smul.u32 12, %s1830_s28  ;;  %v1261_v14 = vsel %vm423_vm4, 1.0, %v1548_v1  ;;  %v1284_v36 = vsel %vm630_vm7, 1.0, %v1548_v1  ;;  %s1740_s9 = sshll.u32 %s1830_s28, 2 }
   0xf   : > { %v426_v17 = vpack.c.bf16 %v1261_v14, %v1261_v14  ;;  %v633_v37 = vpack.c.bf16 %v1284_v36, %v1284_v36  ;;  %s337_s12 = scalar_lea.vmem %s1827_s7, %s1740_s9  ;;  %v1529_v14 = vld [vmem:[%s1824_s4 + $0x28] sm:$0xff]   ;;  %s329_s28 = scalar_lea.vmem %s1821_s1, %s1740_s9 }
  0x10   : > { %s325_s14 = scalar_lea.vmem %s1820_s0, %s1500_s11  ;;  %1421 = vmatpush3.bf16.msra.mxu1 %v1516_v8  ;;  %s341_s17 = scalar_lea.vmem %s1828_s8, %s1740_s9 }
  0x11   : > { %v1635_v9 = vld [vmem:[%s325_s14] sm:$0xff]   ;;  %v1512_v10 = vld [vmem:[%s325_s14 + $0x8] ss:$0 sps:$4 sm:$0x11]   ;;  %1422 = vmatprep.subr.bf16.mxu1 %v1548_v1  ;;  %s333_s20 = scalar_lea.vmem %s1826_s6, %s1740_s9 }
  0x12   : > { %1387 = vmatpush3.bf16.msra.mxu0 %v1635_v9  ;;  %v370_v13 = vsel %vm368_vm2, %v1512_v10, 0 }
  0x13   : > { %1388 = vmatprep.subr.bf16.mxu0 %v1548_v1 }
  0x14   : > { %1423 = vmatpush3.bf16.msra.mxu1 %v1518_v12 }
  0x15   : > { %1424 = vmatprep.subr.bf16.mxu1 %v1548_v1 }
  0x16   : > { %1389 = vmatpush3.bf16.msra.mxu0 %v370_v13 }
  0x17   : > { %1394 = vmatprep.subr.bf16.mxu0 %v1548_v1 }
  0x18   : > { %1425 = vmatpush3.bf16.msra.mxu1 %v587_v21 }
  0x19   : > { %1391 = vmatmul.mubr.msk.bf16.vlgmr.msra.gmra.mrb[0].mxu0 %vm364_vm3, %v354_v15  ;;  %1438 = vmatprep.subr.bf16.mxu1 %v1548_v1  ;;  %v1530_v15 = vld [vmem:[%s1824_s4 + $0x30] sm:$0xff]  }
  0x1a   : > { %1395 = vmatpush3.bf16.msra.mxu0 %v1635_v9  ;;  %1398 = vmatprep.mubr.msk.bf16.mxu0 %vm1549_vm0, %v1548_v1 }
  0x1b   : > { %1396 = vmatprep.subr.bf16.mxu0 %v1548_v1 }
  0x1e   : > { %1397 = vmatpush3.bf16.msra.mxu0 %v370_v13 }
  0x1f   : > { %1402 = vmatprep.subr.bf16.mxu0 %v1548_v1 }
  0x21   : > { %1399 = vmatmul.mubr.msk.bf16.vlgmr.msra.gmra.mrb[4].mxu0 %vm364_vm3, %v426_v17  ;;  %v978_v17 = vadd.s32 1, %v1611_v3  ;;  %v1535_v3 = vld [vmem:[%s1824_s4 + $0x18] sm:$0xff]  }
  0x22   : > { %1403 = vmatpush3.bf16.msra.mxu0 %v1515_v16  ;;  %1412 = vmatprep.mubr.msk.bf16.mxu0 %vm1549_vm0, %v1548_v1  ;;  %v1531_v16 = vld [vmem:[%s1824_s4 + $0x38] sm:$0xff]  }
  0x23   : > { %1404 = vmatprep.subr.bf16.mxu0 %v1548_v1  ;;  %vm979_vm12 = vcmp.eq.s32.totalorder %v1613_v4, %v978_v17  ;;  %v1536_v4 = vld [vmem:[%s1824_s4 + $0x40] sm:$0xff]  }
  0x26   : > { %1405 = vmatpush3.bf16.msra.mxu0 %v1517_v18  ;;  %v1322_v18 = vsel %vm979_vm12, 1.0, %v1548_v1 }
  0x27   : > { %1406 = vmatprep.subr.bf16.mxu0 %v1548_v1  ;;  %v982_v19 = vpack.c.bf16 %v1322_v18, %v1322_v18 }
  0x2a   : > { %1407 = vmatpush3.bf16.msra.mxu0 %v1519_v20 }
  0x2b   : > { %1408 = vmatprep.subr.bf16.mxu0 %v1548_v1 }
  0x2e   : > { %1409 = vmatpush3.bf16.msra.mxu0 %v1521_v22 }
  0x2f   : > { %1410 = vmatprep.subr.bf16.mxu0 %v1548_v1 }
  0x32   : > { %1411 = vmatpush3.bf16.msra.mxu0 %v514_v24 }
  0x33   : > { %1430 = vmatprep.subr.bf16.mxu0 %v1548_v1 }
  0xec   : > { %v406_v25 = vpop.f32.mrb[0].mxu0 }
  0xed   : > { %v412_v26 = vpack.c.bf16 %v406_v25, %v406_v25  ;;  %v1392_v27 = vpop.f32.mrb[1].mxu0  ;;  %v1537_v25 = vld [vmem:[%s1824_s4 + $0x48] sm:$0xff]  }
  0xee   : > { %v409_v28 = vpop.f32.mrb[2].mxu0  ;;  %v1539_v27 = vld [vmem:[%s1824_s4 + $0x58] sm:$0xff]  }
  0xef   : > { %v1393_v29 = vpop.f32.mrb[3].mxu0  ;;  %1427 = vmatmul.mubr.msk.bf16.vlgmr.msra.gmra.mrb[0].mxu1 %vm508_vm6, %v412_v26  ;;  %v1538_v26 = vld [vmem:[%s1824_s4 + $0x50] sm:$0xff]  }
  0xf0   : > { %1448 = vmatprep.mubr.msk.bf16.mxu1 %vm1549_vm0, %v1548_v1  ;;  %1439 = vmatpush3.bf16.msra.mxu1 %v1523_v38 }
  0xf1   : > { %1440 = vmatprep.subr.bf16.mxu1 %v1548_v1 }
  0xf4   : > { %v464_v31 = vpop.f32.mrb[4].mxu0  ;;  %1441 = vmatpush3.bf16.msra.mxu1 %v1524_v39 }
  0xf5   : > { %v470_v32 = vpack.c.bf16 %v464_v31, %v464_v31  ;;  %v1400_v33 = vpop.f32.mrb[5].mxu0  ;;  %1442 = vmatprep.subr.bf16.mxu1 %v1548_v1 }
  0xf6   : > { %v467_v34 = vpop.f32.mrb[6].mxu0 }
  0xf7   : > { %v1401_v35 = vpop.f32.mrb[7].mxu0  ;;  %1413 = vmatmul.mubr.msk.bf16.vlgmr.msra.gmra.mrb[8].mxu0 %vm508_vm6, %v470_v32 }
  0xf8   : > { %1431 = vmatpush3.bf16.msra.mxu0 %v1635_v9  ;;  %1434 = vmatprep.mubr.msk.bf16.mxu0 %vm1549_vm0, %v1548_v1  ;;  %v1302_v9 = vsel %vm775_vm8, 1.0, %v1548_v1 }
  0xf9   : > { %1432 = vmatprep.subr.bf16.mxu0 %v1548_v1  ;;  %1443 = vmatpush3.bf16.msra.mxu1 %v1525_v40  ;;  %v778_v12 = vpack.c.bf16 %v1302_v9, %v1302_v9 }
  0xfa   : > { %1444 = vmatprep.subr.bf16.mxu1 %v1548_v1 }
  0xfc   : > { %1433 = vmatpush3.bf16.msra.mxu0 %v370_v13  ;;  %v1528_v13 = vld [vmem:[%s1824_s4 + $0x20] sm:$0xff]  }
  0xfd   : > { %1452 = vmatprep.subr.bf16.mxu0 %v1548_v1  ;;  %1445 = vmatpush3.bf16.msra.mxu1 %v1526_v41 }
  0xfe   : > { %1446 = vmatprep.subr.bf16.mxu1 %v1548_v1 }
  0xff   : > { %1435 = vmatmul.mubr.msk.bf16.vlgmr.msra.gmra.mrb[12].mxu0 %vm364_vm3, %v633_v37 }
 0x100   : > { %1454 = vmatprep.mubr.msk.bf16.mxu0 %vm1549_vm0, %v1548_v1 }
 0x101   : > { %1447 = vmatpush3.bf16.msra.mxu1 %v719_v43  ;;  %v1337_v43 = vld [vmem:[%s1825_s5] ss:$0 sm:$0xff] }
 0x102   : > { %1470 = vmatprep.subr.bf16.mxu1 %v1548_v1 }
 0x1c2   : > { %v623_v44 = vpop.f32.mrb[0].mxu1 }
 0x1c3   : > { %v1428_v45 = vpop.f32.mrb[1].mxu1 }
 0x1c4   : > { %v626_v46 = vpop.f32.mrb[2].mxu1 }
 0x1c5   : > { %v1429_v47 = vpop.f32.mrb[3].mxu1 }
 0x1ca   : > { %v550_v48 = vpop.f32.mrb[8].mxu0 }
 0x1cb   : > { %v624_v49 = vadd.f32 %v623_v44, %v550_v48  ;;  %v1414_v50 = vpop.f32.mrb[9].mxu0 }
 0x1cc   : > { %v553_v51 = vpop.f32.mrb[10].mxu0 }
 0x1cd   : > { %v1415_v52 = vpop.f32.mrb[11].mxu0 }
 0x1d2   : > { %v671_v53 = vpop.f32.mrb[12].mxu0 }
 0x1d3   : > { %v677_v54 = vpack.c.bf16 %v671_v53, %v671_v53  ;;  %v1436_v55 = vpop.f32.mrb[13].mxu0 }
 0x1d4   : > { %v674_v56 = vpop.f32.mrb[14].mxu0 }
 0x1d5   : > { %v1437_v57 = vpop.f32.mrb[15].mxu0  ;;  %1449 = vmatmul.mubr.msk.bf16.vlgmr.msra.gmra.mrb[4].mxu1 %vm508_vm6, %v677_v54 }
 0x1d6   : > { %1478 = vmatprep.mubr.msk.bf16.mxu1 %vm1549_vm0, %v1548_v1  ;;  %1471 = vmatpush3.bf16.msra.mxu1 %v1532_v58 }
 0x1d7   : > { %1472 = vmatprep.subr.bf16.mxu1 %v1548_v1 }
 0x1da   : > { %1473 = vmatpush3.bf16.msra.mxu1 %v1533_v59 }
 0x1db   : > { %1474 = vmatprep.subr.bf16.mxu1 %v1548_v1 }
 0x1de   : > { %1475 = vmatpush3.bf16.msra.mxu1 %v1534_v60 }
 0x1df   : > { %1476 = vmatprep.subr.bf16.mxu1 %v1548_v1 }
 0x1e2   : > { %1477 = vmatpush3.bf16.msra.mxu1 %v1535_v3 }
 0x1e3   : > { %1488 = vmatprep.subr.bf16.mxu1 %v1548_v1 }
 0x2a8   : > { %v755_v62 = vpop.f32.mrb[4].mxu1 }
 0x2a9   : > { %v761_v0 = vadd.f32 %v755_v62, %v624_v49  ;;  %v1450_v2 = vpop.f32.mrb[5].mxu1 }
 0x2aa   : > { %v758_v5 = vpop.f32.mrb[6].mxu1 }
 0x2ab   : > { %v769_v6 = vadd.f32 %v1301_v63, %v761_v0  ;;  %v1451_v7 = vpop.f32.mrb[7].mxu1 }
 0x2ad   : > { %v770_v8 = vmax.f32 %v769_v6, 0.0 }
 0x2af   : > { %v771_v10 = vpack.c.bf16 %v770_v8, %v770_v8 }
 0x2b1   : > { %773 = vst.msk [vmem:[%s337_s12] sm:$0xf] %vm772_vm9, %v771_v10  ;;  %v784_v11 = vsel %vm512_vm5, %v771_v10, 0 }
 0x2b2   : > { %1453 = vmatpush3.bf16.msra.mxu0 %v784_v11 }
 0x2b3   : > { %1458 = vmatprep.subr.bf16.mxu0 %v1548_v1 }
 0x2b5   : > { %1455 = vmatmul.mubr.msk.bf16.vlgmr.msra.gmra.mrb[16].mxu0 %vm779_vm10, %v778_v12 }
 0x2b6   : > { %1459 = vmatpush3.bf16.msra.mxu0 %v1528_v13  ;;  %1466 = vmatprep.mubr.msk.bf16.mxu0 %vm1549_vm0, %v1548_v1 }
 0x2b7   : > { %1460 = vmatprep.subr.bf16.mxu0 %v1548_v1 }
 0x2ba   : > { %1461 = vmatpush3.bf16.msra.mxu0 %v1529_v14 }
 0x2bb   : > { %1462 = vmatprep.subr.bf16.mxu0 %v1548_v1 }
 0x2be   : > { %1463 = vmatpush3.bf16.msra.mxu0 %v1530_v15 }
 0x2bf   : > { %1464 = vmatprep.subr.bf16.mxu0 %v1548_v1 }
 0x2c2   : > { %1465 = vmatpush3.bf16.msra.mxu0 %v1531_v16 }
 0x2c3   : > { %1482 = vmatprep.subr.bf16.mxu0 %v1548_v1 }
 0x2c5   : > { %1467 = vmatmul.mubr.msk.bf16.vlgmr.msra.gmra.mrb[20].mxu0 %vm868_vm11, %v771_v10 }
 0x2c6   : > { %1483 = vmatpush3.bf16.msra.mxu0 %v784_v11  ;;  %1484 = vmatprep.mubr.msk.bf16.mxu0 %vm1549_vm0, %v1548_v1 }
 0x2cd   : > { %1485 = vmatmul.mubr.msk.bf16.vlgmr.msra.gmra.mrb[24].mxu0 %vm779_vm10, %v982_v19 }
 0x388   : > { %v820_v20 = vpop.f32.mrb[16].mxu0 }
 0x389   : > { %v826_v21 = vpack.c.bf16 %v820_v20, %v820_v20  ;;  %v1456_v22 = vpop.f32.mrb[17].mxu0 }
 0x38a   : > { %v823_v23 = vpop.f32.mrb[18].mxu0 }
 0x38b   : > { %1479 = vmatmul.mubr.msk.bf16.vlgmr.msra.gmra.mrb[8].mxu1 %vm868_vm11, %v826_v21  ;;  %v1457_v24 = vpop.f32.mrb[19].mxu0 }
 0x38c   : > { %1489 = vmatpush3.bf16.msra.mxu1 %v1536_v4  ;;  %1496 = vmatprep.mubr.msk.bf16.mxu1 %vm1549_vm0, %v1548_v1 }
 0x38d   : > { %1490 = vmatprep.subr.bf16.mxu1 %v1548_v1 }
 0x390   : > { %1491 = vmatpush3.bf16.msra.mxu1 %v1537_v25 }
 0x391   : > { %1492 = vmatprep.subr.bf16.mxu1 %v1548_v1 }
 0x394   : > { %1493 = vmatpush3.bf16.msra.mxu1 %v1538_v26 }
 0x395   : > { %1494 = vmatprep.subr.bf16.mxu1 %v1548_v1  ;;  %v1114_v1 = vld [vmem:[%s329_s28] sm:$0xf] }
 0x396   : > { %v1115_v45 = vunpack.c.l.bf16 %v1114_v1 }
 0x398   : > { %v905_v28 = vpop.f32.mrb[20].mxu0  ;;  %1495 = vmatpush3.bf16.msra.mxu1 %v1539_v27 }
 0x399   : > { %v1468_v29 = vpop.f32.mrb[21].mxu0 }
 0x39a   : > { %v908_v30 = vpop.f32.mrb[22].mxu0 }
 0x39b   : > { %v1469_v31 = vpop.f32.mrb[23].mxu0 }
 0x3a0   : > { %v1020_v32 = vpop.f32.mrb[24].mxu0 }
 0x3a1   : > { %v1026_v33 = vpack.c.bf16 %v1020_v32, %v1020_v32  ;;  %v1486_v34 = vpop.f32.mrb[25].mxu0 }
 0x3a2   : > { %v1023_v35 = vpop.f32.mrb[26].mxu0 }
 0x3a3   : > { %1497 = vmatmul.mubr.msk.bf16.vlgmr.msra.gmra.mrb[12].mxu1 %vm868_vm11, %v1026_v33  ;;  %v1487_v36 = vpop.f32.mrb[27].mxu0 }
 0x45e   : > { %v972_v37 = vpop.f32.mrb[8].mxu1 }
 0x45f   : > { %v973_v38 = vadd.f32 %v972_v37, %v905_v28  ;;  %v1480_v39 = vpop.f32.mrb[9].mxu1 }
 0x460   : > { %v975_v40 = vpop.f32.mrb[10].mxu1 }
 0x461   : > { %v1481_v41 = vpop.f32.mrb[11].mxu1 }
 0x476   : > { %v1097_v42 = vpop.f32.mrb[12].mxu1 }
 0x477   : > { %v1103_v44 = vadd.f32 %v1097_v42, %v973_v38  ;;  %v1498_v46 = vpop.f32.mrb[13].mxu1 }
 0x478   : > { %v1100_v47 = vpop.f32.mrb[14].mxu1 }
 0x479   : > { %v1111_v48 = vadd.f32 %v1337_v43, %v1103_v44  ;;  %v1499_v49 = vpop.f32.mrb[15].mxu1 }
 0x47b   : > { %v1112_v50 = vpack.c.bf16 %v1111_v48, %v1111_v48  ;;  %v1116_v51 = vadd.f32 %v1115_v45, %v1111_v48 }
 0x47d   : > { %1113 = vst.msk [vmem:[%s341_s17] sm:$0xf] %vm772_vm9, %v1112_v50  ;;  %v1117_v52 = vmax.f32 %v1116_v51, 0.0 }
 0x47f   : > { %v1118_v53 = vpack.c.bf16 %v1117_v52, %v1117_v52 }
 0x481   : > { %1119 = vst.msk [vmem:[%s333_s20] sm:$0xf] %vm772_vm9, %v1118_v53 }
 0x482 PF: > { %s19_s27 = sadd.s32 1, %s1546_s27  }
 0x483   : > { %p16_p4 = scmp.ge.s32.totalorder %s19_s27, 4  }
 0x485   :  { %18 = sbr.rel (!%p16_p4) target bundleno = 1 (0x1), region = 105 }

</bundles_post_ra>
